<compile_context>
chip_gen: v6e
topology: v6e:2x2x1
jax: 0.10.0
libtpu: 0.0.40
codegen_flags: <defaults>
</compile_context>

<pallas_src>
import functools

import jax
import jax.numpy as jnp
from jax.experimental import pallas as pl
from jax.experimental.pallas import tpu as pltpu


def actor_kernel(x_ref, w1_ref, b1_ref, w2_ref, b2_ref, w3_ref, b3_ref, o_ref):
    """Transposed layout: x_ref is (state_dim, B_tile), o_ref is (action_dim, B_tile)."""
    xT = x_ref[...]

    # fc1 + relu : (fc1, state) @ (state, Bt)
    h1 = jnp.dot(w1_ref[...].astype(jnp.bfloat16), xT.astype(jnp.bfloat16),
                 preferred_element_type=jnp.float32)
    h1 = jnp.maximum(h1 + b1_ref[...], 0.0)

    # fc2 + relu : (fc2, fc1) @ (fc1, Bt)
    h2 = jnp.dot(w2_ref[...].astype(jnp.bfloat16), h1.astype(jnp.bfloat16),
                 preferred_element_type=jnp.float32)
    h2 = jnp.maximum(h2 + b2_ref[...], 0.0)

    # fc3 + tanh : (act, fc2) @ (fc2, Bt)
    h3 = jnp.dot(w3_ref[...].astype(jnp.bfloat16), h2.astype(jnp.bfloat16),
                 preferred_element_type=jnp.float32)
    o_ref[...] = jnp.tanh(h3 + b3_ref[...]).astype(o_ref.dtype)


@functools.partial(jax.jit, static_argnames=("b_tile",))
def actor_forward(x, params, *, b_tile=512):
    """x: (B, state_dim) f32.
    params: w1 (fc1, state), b1 (fc1, 1), w2 (fc2, fc1), b2 (fc2, 1),
            w3 (act, fc2),  b3 (act, 1)   (PyTorch-native weight layout).
    Returns (B, action_dim) f32."""
    w1, b1, w2, b2, w3, b3 = (params[k] for k in ("w1", "b1", "w2", "b2", "w3", "b3"))
    B, state_dim = x.shape
    fc1_units = w1.shape[0]
    fc2_units = w2.shape[0]
    action_dim = w3.shape[0]

    # Batch lives on the 128-lane axis: pad to a multiple of 128 and tile.
    b_tile = max(128, (b_tile // 128) * 128)
    b_tile = min(b_tile, pl.cdiv(B, 128) * 128)      # don't over-pad tiny batches
    Bp = pl.cdiv(B, b_tile) * b_tile
    num_tiles = Bp // b_tile

    xT = x.T                                         # (state_dim, B)
    if Bp != B:
        xT = jnp.pad(xT, ((0, 0), (0, Bp - B)))      # zero lanes, sliced off below

    # Constant index_map -> operand stays resident in VMEM across grid steps.
    resident = lambda a: pl.BlockSpec(a.shape, lambda i: (0, 0))

    n_param_elems = sum(int(a.size) for a in (w1, b1, w2, b2, w3, b3))
    cost = pl.CostEstimate(
        flops=2 * Bp * (state_dim * fc1_units
                        + fc1_units * fc2_units
                        + fc2_units * action_dim),
        transcendentals=Bp * action_dim,
        bytes_accessed=4 * (Bp * (state_dim + action_dim) + n_param_elems),
    )

    # Per-step VMEM footprint is ~b_tile*(state+act)*4B*2 buffers + ~22 KiB of
    # weights: tiny even under v7x's 32 MiB scoped default, so no explicit
    # vmem_limit_bytes is needed.
    outT = pl.pallas_call(
        actor_kernel,
        out_shape=jax.ShapeDtypeStruct((action_dim, Bp), jnp.float32),
        grid=(num_tiles,),
        in_specs=[
            pl.BlockSpec((state_dim, b_tile), lambda i: (0, i)),
            resident(w1), resident(b1),
            resident(w2), resident(b2),
            resident(w3), resident(b3),
        ],
        out_specs=pl.BlockSpec((action_dim, b_tile), lambda i: (0, i)),
        compiler_params=pltpu.CompilerParams(
            dimension_semantics=("parallel",),       # megacore / 2-TC sharding
        ),
        cost_estimate=cost,
    )(xT, w1, b1, w2, b2, w3, b3)

    return outT[:, :B].T


def init_actor_params(key, state_dim, action_dim, fc1_units=64, fc2_units=64):
    """Deterministic init mirroring Actor init (fan-in uniform, small last layer).
    Weights stored PyTorch-native (out_features, in_features); biases (out, 1)."""
    k1, k2, k3, k4, k5, k6 = jax.random.split(key, 6)

    def fanin_uniform(k, shape, fanin):
        v = 1.0 / jnp.sqrt(jnp.asarray(fanin, jnp.float32))
        return jax.random.uniform(k, shape, jnp.float32, -v, v)

    w1 = fanin_uniform(k1, (fc1_units, state_dim), state_dim)
    b1 = fanin_uniform(k2, (fc1_units, 1), state_dim)
    w2 = fanin_uniform(k3, (fc2_units, fc1_units), fc1_units)
    b2 = fanin_uniform(k4, (fc2_units, 1), fc1_units)
    w3 = jax.random.uniform(k5, (action_dim, fc2_units), jnp.float32, -0.003, 0.003)
    b3 = jax.random.uniform(k6, (action_dim, 1), jnp.float32, -0.003, 0.003)
    return {"w1": w1, "b1": b1, "w2": w2, "b2": b2, "w3": w3, "b3": b3}


if __name__ == "__main__":
    key = jax.random.PRNGKey(0)
    kx, kp = jax.random.split(key)

    batch, state_dim, action_dim = 8, 16, 8
    x = jax.random.normal(kx, (batch, state_dim), dtype=jnp.float32)
    params = init_actor_params(kp, state_dim, action_dim)

    out = actor_forward(x, params)
    jax.block_until_ready(out)

    # f32 reference in plain JAX (weights are (out, in), biases (out, 1)).
    h = jnp.maximum(x @ params["w1"].T + params["b1"][:, 0], 0.0)
    h = jnp.maximum(h @ params["w2"].T + params["b2"][:, 0], 0.0)
    ref = jnp.tanh(h @ params["w3"].T + params["b3"][:, 0])

    assert out.shape == (batch, action_dim)
    # bf16 MXU operands (f32 accumulation) -> relaxed tolerance vs f32 reference.
    assert jnp.allclose(out, ref, atol=2e-2, rtol=2e-2), "mismatch vs reference"

    print("KERNEL_OK")
</pallas_src>

<mosaic_0001>
module attributes {stable_mosaic.version = 11 : i64} {
  func.func @actor_kernel(%arg0: i32, %arg1: memref<16x128xf32, #tpu.memory_space<vmem>>, %arg2: memref<64x16xf32, #tpu.memory_space<vmem>>, %arg3: memref<64x1xf32, #tpu.memory_space<vmem>>, %arg4: memref<64x64xf32, #tpu.memory_space<vmem>>, %arg5: memref<64x1xf32, #tpu.memory_space<vmem>>, %arg6: memref<8x64xf32, #tpu.memory_space<vmem>>, %arg7: memref<8x1xf32, #tpu.memory_space<vmem>>, %arg8: memref<8x128xf32, #tpu.memory_space<vmem>>) attributes {dimension_semantics = [#tpu.dimension_semantics<parallel>], iteration_bounds = array<i64: 1>, scalar_prefetch = 0 : i64, scratch_operands = 0 : i64, tpu.core_type = #tpu.core_type<tc>, window_params = [{transform_indices = @transform_0, window_bounds = array<i64: 16, 128>}, {pipeline_mode = #tpu.pipeline_mode<synchronous>, transform_indices = @transform_1, window_bounds = array<i64: 64, 16>}, {pipeline_mode = #tpu.pipeline_mode<synchronous>, transform_indices = @transform_2, window_bounds = array<i64: 64, 1>}, {pipeline_mode = #tpu.pipeline_mode<synchronous>, transform_indices = @transform_3, window_bounds = array<i64: 64, 64>}, {pipeline_mode = #tpu.pipeline_mode<synchronous>, transform_indices = @transform_4, window_bounds = array<i64: 64, 1>}, {pipeline_mode = #tpu.pipeline_mode<synchronous>, transform_indices = @transform_5, window_bounds = array<i64: 8, 64>}, {pipeline_mode = #tpu.pipeline_mode<synchronous>, transform_indices = @transform_6, window_bounds = array<i64: 8, 1>}, {transform_indices = @transform_7, window_bounds = array<i64: 8, 128>}]} {
    %c0 = arith.constant 0 : index
    %c0_0 = arith.constant 0 : index
    %0 = vector.load %arg1[%c0, %c0_0] : memref<16x128xf32, #tpu.memory_space<vmem>>, vector<16x128xf32>
    %c0_1 = arith.constant 0 : index
    %c0_2 = arith.constant 0 : index
    %1 = vector.load %arg2[%c0_1, %c0_2] : memref<64x16xf32, #tpu.memory_space<vmem>>, vector<64x16xf32>
    %2 = arith.truncf %1 : vector<64x16xf32> to vector<64x16xbf16>
    %3 = arith.truncf %0 : vector<16x128xf32> to vector<16x128xbf16>
    %cst = arith.constant dense<0.000000e+00> : vector<64x128xf32>
    %4 = tpu.matmul %2, %3, %cst {dimension_numbers = #tpu.dot_dimension_numbers<[1], [0], [0], [1], [0, 0, 1, 1], [], []>} : vector<64x16xbf16>, vector<16x128xbf16>, vector<64x128xf32> -> vector<64x128xf32>
    %c0_3 = arith.constant 0 : index
    %c0_4 = arith.constant 0 : index
    %5 = vector.load %arg3[%c0_3, %c0_4] : memref<64x1xf32, #tpu.memory_space<vmem>>, vector<64x1xf32>
    %6 = vector.broadcast %5 : vector<64x1xf32> to vector<64x128xf32>
    %7 = arith.addf %4, %6 : vector<64x128xf32>
    %cst_5 = arith.constant 0.000000e+00 : f32
    %8 = vector.broadcast %cst_5 : f32 to vector<64x128xf32>
    %9 = arith.maximumf %7, %8 : vector<64x128xf32>
    %c0_6 = arith.constant 0 : index
    %c0_7 = arith.constant 0 : index
    %10 = vector.load %arg4[%c0_6, %c0_7] : memref<64x64xf32, #tpu.memory_space<vmem>>, vector<64x64xf32>
    %11 = arith.truncf %10 : vector<64x64xf32> to vector<64x64xbf16>
    %12 = arith.truncf %9 : vector<64x128xf32> to vector<64x128xbf16>
    %cst_8 = arith.constant dense<0.000000e+00> : vector<64x128xf32>
    %13 = tpu.matmul %11, %12, %cst_8 {dimension_numbers = #tpu.dot_dimension_numbers<[1], [0], [0], [1], [0, 0, 1, 1], [], []>} : vector<64x64xbf16>, vector<64x128xbf16>, vector<64x128xf32> -> vector<64x128xf32>
    %c0_9 = arith.constant 0 : index
    %c0_10 = arith.constant 0 : index
    %14 = vector.load %arg5[%c0_9, %c0_10] : memref<64x1xf32, #tpu.memory_space<vmem>>, vector<64x1xf32>
    %15 = vector.broadcast %14 : vector<64x1xf32> to vector<64x128xf32>
    %16 = arith.addf %13, %15 : vector<64x128xf32>
    %cst_11 = arith.constant 0.000000e+00 : f32
    %17 = vector.broadcast %cst_11 : f32 to vector<64x128xf32>
    %18 = arith.maximumf %16, %17 : vector<64x128xf32>
    %c0_12 = arith.constant 0 : index
    %c0_13 = arith.constant 0 : index
    %19 = vector.load %arg6[%c0_12, %c0_13] : memref<8x64xf32, #tpu.memory_space<vmem>>, vector<8x64xf32>
    %20 = arith.truncf %19 : vector<8x64xf32> to vector<8x64xbf16>
    %21 = arith.truncf %18 : vector<64x128xf32> to vector<64x128xbf16>
    %cst_14 = arith.constant dense<0.000000e+00> : vector<8x128xf32>
    %22 = tpu.matmul %20, %21, %cst_14 {dimension_numbers = #tpu.dot_dimension_numbers<[1], [0], [0], [1], [0, 0, 1, 1], [], []>} : vector<8x64xbf16>, vector<64x128xbf16>, vector<8x128xf32> -> vector<8x128xf32>
    %c0_15 = arith.constant 0 : index
    %c0_16 = arith.constant 0 : index
    %23 = vector.load %arg7[%c0_15, %c0_16] : memref<8x1xf32, #tpu.memory_space<vmem>>, vector<8x1xf32>
    %24 = vector.broadcast %23 : vector<8x1xf32> to vector<8x128xf32>
    %25 = arith.addf %22, %24 : vector<8x128xf32>
    %26 = math.tanh %25 : vector<8x128xf32>
    %c0_17 = arith.constant 0 : index
    %c0_18 = arith.constant 0 : index
    %27 = vector.load %arg8[%c0_17, %c0_18] : memref<8x128xf32, #tpu.memory_space<vmem>>, vector<8x128xf32>
    tpu.vector_store %arg8[%c0_17, %c0_18], %26 {strides = array<i32>} : memref<8x128xf32, #tpu.memory_space<vmem>>, vector<8x128xf32>,
    return
  }
  func.func @transform_0(%arg0: i32) -> (i32, i32) {
    %c0_i32 = arith.constant 0 : i32
    %c0_i32_0 = arith.constant 0 : i32
    return %c0_i32, %arg0 : i32, i32
  }
  func.func @transform_1(%arg0: i32) -> (i32, i32) {
    %c0_i32 = arith.constant 0 : i32
    %c0_i32_0 = arith.constant 0 : i32
    %c0_i32_1 = arith.constant 0 : i32
    return %c0_i32, %c0_i32_0 : i32, i32
  }
  func.func @transform_2(%arg0: i32) -> (i32, i32) {
    %c0_i32 = arith.constant 0 : i32
    %c0_i32_0 = arith.constant 0 : i32
    %c0_i32_1 = arith.constant 0 : i32
    return %c0_i32, %c0_i32_0 : i32, i32
  }
  func.func @transform_3(%arg0: i32) -> (i32, i32) {
    %c0_i32 = arith.constant 0 : i32
    %c0_i32_0 = arith.constant 0 : i32
    %c0_i32_1 = arith.constant 0 : i32
    return %c0_i32, %c0_i32_0 : i32, i32
  }
  func.func @transform_4(%arg0: i32) -> (i32, i32) {
    %c0_i32 = arith.constant 0 : i32
    %c0_i32_0 = arith.constant 0 : i32
    %c0_i32_1 = arith.constant 0 : i32
    return %c0_i32, %c0_i32_0 : i32, i32
  }
  func.func @transform_5(%arg0: i32) -> (i32, i32) {
    %c0_i32 = arith.constant 0 : i32
    %c0_i32_0 = arith.constant 0 : i32
    %c0_i32_1 = arith.constant 0 : i32
    return %c0_i32, %c0_i32_0 : i32, i32
  }
  func.func @transform_6(%arg0: i32) -> (i32, i32) {
    %c0_i32 = arith.constant 0 : i32
    %c0_i32_0 = arith.constant 0 : i32
    %c0_i32_1 = arith.constant 0 : i32
    return %c0_i32, %c0_i32_0 : i32, i32
  }
  func.func @transform_7(%arg0: i32) -> (i32, i32) {
    %c0_i32 = arith.constant 0 : i32
    %c0_i32_0 = arith.constant 0 : i32
    return %c0_i32, %arg0 : i32, i32
  }
}

</mosaic_0001>

<bundles_post_ra>
// kernel: actor_forward.1
= control target key start
LH: loop header
LB: loop body
LE: loop exit
PB: predicated region body
PF: predicated region fallthrough
CT: control target
= control target key end

     0   :  { %v459_v3 = vmov 0   ;;  %vm90_vm0 = vcmask 130048   ;;  %vm240_vm1 = vcmask 523264   ;;  %vm461_vm2 = vmmov 0   ;;  %s622_s0 = inlined_call_operand.vmem [shape: f32[16,128], index: 0, kind: input, shape index: {}]   ;;  %s623_s1 = inlined_call_operand.vmem [shape: f32[64,16], index: 1, kind: input, shape index: {}]   ;;  %s624_s2 = inlined_call_operand.vmem [shape: f32[64,1], index: 2, kind: input, shape index: {}]   ;;  %s625_s4 = inlined_call_operand.vmem [shape: f32[64,1], index: 4, kind: input, shape index: {}]   ;;  %s626_s6 = inlined_call_operand.vmem [shape: f32[8,1], index: 6, kind: input, shape index: {}]   ;;  %s627_s3 = inlined_call_operand.vmem [shape: f32[64,64], index: 3, kind: input, shape index: {}]   ;;  %s628_s5 = inlined_call_operand.vmem [shape: f32[8,64], index: 5, kind: input, shape index: {}]   ;;  %s629_s7 = inlined_call_operand.vmem [shape: f32[8,128], index: 7, kind: output, shape index: {}]  }
   0x1   :  { %v27_v0 = vld [vmem:[%s622_s0] sm:$0xff]  ;;  %v28_v1 = vld [vmem:[%s622_s0 + $0x8] sm:$0xff]  ;;  %455 = vset.pattern.permute.xlu0 %v459_v3  ;;  %456 = vset.pattern.permute.xlu1 %v459_v3  ;;  %v31_v6 = vld [vmem:[%s623_s1 + $0x10] sm:$0xff] }
   0x2   :  { %v29_v2 = vld [vmem:[%s623_s1] sm:$0xff]  ;;  %v41_v4 = vpack.c.bf16 %v28_v1, %v27_v0  ;;  %v30_v5 = vld [vmem:[%s623_s1 + $0x8] sm:$0xff]  ;;  %v32_v7 = vld [vmem:[%s623_s1 + $0x18] sm:$0xff] }
   0x3   :  { %v37_v8 = vpack.c.bf16 %v30_v5, %v29_v2  ;;  %v33_v9 = vld [vmem:[%s623_s1 + $0x20] sm:$0xff]  ;;  %v34_v10 = vld [vmem:[%s623_s1 + $0x28] sm:$0xff]  ;;  %v38_v11 = vpack.c.bf16 %v32_v7, %v31_v6  ;;  %v48_v12 = vld [vmem:[%s624_s2 + $0x30] sm:$0xff] }
   0x4   :  { %414 = vmatprep.subr.bf16.mxu0 %v41_v4  ;;  %v39_v13 = vpack.c.bf16 %v34_v10, %v33_v9  ;;  %v46_v14 = vld [vmem:[%s624_s2 + $0x20] sm:$0xff]  ;;  %82 = vperm.xlu0 %455, %v48_v12   ;;  %v49_v15 = vld [vmem:[%s624_s2 + $0x38] sm:$0xff]  ;;  %v47_v16 = vld [vmem:[%s624_s2 + $0x28] sm:$0xff] }
   0x5   :  { %415 = vmatpush3.bf16.msra.mxu0 %v41_v4  ;;  %416 = vmatprep.mubr.msk.bf16.mxu0 %vm90_vm0, %v37_v8  ;;  %v35_v17 = vld [vmem:[%s623_s1 + $0x30] sm:$0xff]  ;;  %v36_v18 = vld [vmem:[%s623_s1 + $0x38] sm:$0xff]  ;;  %v42_v22 = vld [vmem:[%s624_s2] sm:$0xff] }
   0x6   :  { %72 = vperm.xlu1 %456, %v46_v14   ;;  %v44_v19 = vld [vmem:[%s624_s2 + $0x10] sm:$0xff]  ;;  %v45_v20 = vld [vmem:[%s624_s2 + $0x18] sm:$0xff]  ;;  %v40_v21 = vpack.c.bf16 %v36_v18, %v35_v17  ;;  %v43_v23 = vld [vmem:[%s624_s2 + $0x8] sm:$0xff]  ;;  %v460_v17 = vmov 0.0  }
   0x7   :  { %v198_v24 = vld [vmem:[%s625_s4 + $0x30] sm:$0xff]  ;;  %v199_v25 = vld [vmem:[%s625_s4 + $0x38] sm:$0xff]  ;;  %v196_v26 = vld [vmem:[%s625_s4 + $0x20] sm:$0xff]  ;;  %440 = vmatprep.subr.bf16.mxu0 %v460_v17 }
   0x8   :  { %417 = vmatmul.mubr.msk.bf16.vlgmr.msra.gmra.mxu0 %vm90_vm0, %v38_v11  ;;  %87 = vperm.xlu0 %455, %v49_v15   ;;  %v197_v27 = vld [vmem:[%s625_s4 + $0x28] sm:$0xff]  ;;  %v194_v28 = vld [vmem:[%s625_s4 + $0x10] sm:$0xff]  ;;  %v195_v29 = vld [vmem:[%s625_s4 + $0x18] sm:$0xff] }
   0x9   :  { %420 = vmatprep.mubr.msk.bf16.mxu0 %vm90_vm0, %v39_v13  ;;  %v192_v30 = vld [vmem:[%s625_s4] sm:$0xff]  ;;  %v193_v31 = vld [vmem:[%s625_s4 + $0x8] sm:$0xff]  ;;  %v178_v8 = vld [vmem:[%s627_s3 + $0x10] sm:$0xff] }
   0xa   :  { %77 = vperm.xlu1 %456, %v47_v16   ;;  %v332_v32 = vld [vmem:[%s626_s6] sm:$0xff]  ;;  %v177_v34 = vld [vmem:[%s627_s3 + $0x8] sm:$0xff]  ;;  %v179_v9 = vld [vmem:[%s627_s3 + $0x18] sm:$0xff] }
   0xb   :  { %v176_v33 = vld [vmem:[%s627_s3] sm:$0xff]  ;;  %v181_v11 = vld [vmem:[%s627_s3 + $0x28] sm:$0xff]  ;;  %v185_v12 = vpack.c.bf16 %v179_v9, %v178_v8  ;;  %v182_v14 = vld [vmem:[%s627_s3 + $0x30] sm:$0xff] }
   0xc   :  { %62 = vperm.xlu0 %455, %v44_v19   ;;  %v184_v35 = vpack.c.bf16 %v177_v34, %v176_v33  ;;  %v180_v10 = vld [vmem:[%s627_s3 + $0x20] sm:$0xff]  ;;  %v183_v15 = vld [vmem:[%s627_s3 + $0x38] sm:$0xff] }
   0xd   :  { %v186_v13 = vpack.c.bf16 %v181_v11, %v180_v10  ;;  %v187_v16 = vpack.c.bf16 %v183_v15, %v182_v14 }
   0xe   :  { %67 = vperm.xlu1 %456, %v45_v20   ;;  %432 = vmatprep.mubr.msk.bf16.mxu1 %vm240_vm1, %v184_v35 }
  0x10   :  { %421 = vmatmul.mubr.msk.bf16.gmra.mxu0 %vm90_vm0, %v40_v21  ;;  %52 = vperm.xlu0 %455, %v42_v22  }
  0x11   :  { %448 = vmatprep.mubr.msk.bf16.mxu0 %vm461_vm2, %v460_v17 }
  0x12   :  { %57 = vperm.xlu1 %456, %v43_v23  }
  0x14   :  { %232 = vperm.xlu0 %455, %v198_v24  }
  0x16   :  { %237 = vperm.xlu1 %456, %v199_v25  }
  0x18   :  { %222 = vperm.xlu0 %455, %v196_v26  }
  0x1a   :  { %227 = vperm.xlu1 %456, %v197_v27  }
  0x1c   :  { %212 = vperm.xlu0 %455, %v194_v28  }
  0x1e   :  { %217 = vperm.xlu1 %456, %v195_v29  }
  0x20   :  { %202 = vperm.xlu0 %455, %v192_v30  }
  0x22   :  { %207 = vperm.xlu1 %456, %v193_v31  }
  0x24   :  { %335 = vperm.xlu0 %455, %v332_v32  }
  0x7f   :  { %v83_v38 = vpop.permute.xlu0 %82 }
  0x81   :  { %v73_v36 = vpop.permute.xlu1 %72 }
  0x83   :  { %v88_v43 = vpop.permute.xlu0 %87 }
  0x85   :  { %v78_v41 = vpop.permute.xlu1 %77 }
  0x87   :  { %v63_v51 = vpop.permute.xlu0 %62 }
  0x89   :  { %v68_v47 = vpop.permute.xlu1 %67 }
  0x8b   :  { %v53_v1 = vpop.permute.xlu0 %52 }
  0x8d   :  { %v58_v61 = vpop.permute.xlu1 %57 }
  0x8f   :  { %v233_v21 = vpop.permute.xlu0 %232 }
  0x91   :  { %v238_v19 = vpop.permute.xlu1 %237 }
  0x93   :  { %v223_v26 = vpop.permute.xlu0 %222 }
  0x95   :  { %v228_v24 = vpop.permute.xlu1 %227 }
  0x99   :  { %v218_v31 = vpop.permute.xlu1 %217 }
  0xc8   :  { %v418_v37 = vpop.f32.mrf.mxu0 }
  0xc9   :  { %v146_v57 = vadd.f32 %v418_v37, %v63_v51  ;;  %v213_v37 = vpop.permute.xlu0 %212 }
  0xca   :  { %v137_v39 = vpop.f32.mrf.mxu0 }
  0xcb   :  { %v170_v2 = vmax.f32 %v146_v57, 0.0  ;;  %v138_v3 = vadd.f32 %v137_v39, %v53_v1 }
  0xcc   :  { %v419_v40 = vpop.f32.mrf.mxu0 }
  0xcd   :  { %v149_v53 = vadd.f32 %v419_v40, %v68_v47  ;;  %v168_v6 = vmax.f32 %v138_v3, 0.0  ;;  %v203_v47 = vpop.permute.xlu0 %202 }
  0xce   :  { %v140_v42 = vpop.f32.mrf.mxu0 }
  0xcf   :  { %v171_v62 = vmax.f32 %v149_v53, 0.0  ;;  %v141_v63 = vadd.f32 %v140_v42, %v58_v61  ;;  %v326_v53 = vld [vmem:[%s628_s5] sm:$0xff] }
  0xd0   :  { %v422_v44 = vpop.f32.mrf.mxu0 }
  0xd1   :  { %v162_v46 = vadd.f32 %v422_v44, %v83_v38  ;;  %v189_v4 = vpack.c.bf16 %v171_v62, %v170_v2  ;;  %v169_v5 = vmax.f32 %v141_v63, 0.0 }
  0xd2   :  { %v153_v45 = vpop.f32.mrf.mxu0 }
  0xd3   :  { %v154_v49 = vadd.f32 %v153_v45, %v73_v36  ;;  %v174_v54 = vmax.f32 %v162_v46, 0.0  ;;  %v188_v7 = vpack.c.bf16 %v169_v5, %v168_v6 }
  0xd4   :  { %v423_v48 = vpop.f32.mrf.mxu0 }
  0xd5   :  { %v165_v50 = vadd.f32 %v423_v48, %v88_v43  ;;  %v172_v58 = vmax.f32 %v154_v49, 0.0  ;;  %v208_v43 = vpop.permute.xlu1 %207 }
  0xd6   :  { %v156_v52 = vpop.f32.mrf.mxu0 }
  0xd7   :  { %v175_v55 = vmax.f32 %v165_v50, 0.0  ;;  %v157_v56 = vadd.f32 %v156_v52, %v78_v41 }
  0xd9   :  { %v173_v59 = vmax.f32 %v157_v56, 0.0  ;;  %v191_v60 = vpack.c.bf16 %v175_v55, %v174_v54  ;;  %v327_v55 = vpack.c.bf16 %v326_v53, %v326_v53  ;;  %v336_v56 = vpop.permute.xlu0 %335 }
  0xdb   :  { %v190_v0 = vpack.c.bf16 %v173_v59, %v172_v58  ;;  %424 = vmatprep.subr.bf16.mxu1 %v191_v60 }
  0xdc   :  { %425 = vmatpush3.bf16.msra.mxu1 %v191_v60 }
  0xdd   :  { %426 = vmatprep.subr.bf16.mxu1 %v190_v0 }
  0xe0   :  { %427 = vmatpush3.bf16.msra.mxu1 %v190_v0 }
  0xe1   :  { %428 = vmatprep.subr.bf16.mxu1 %v189_v4 }
  0xe4   :  { %429 = vmatpush3.bf16.msra.mxu1 %v189_v4 }
  0xe5   :  { %430 = vmatprep.subr.bf16.mxu1 %v188_v7 }
  0xe8   :  { %431 = vmatpush3.bf16.msra.mxu1 %v188_v7 }
  0xeb   :  { %433 = vmatmul.mubr.msk.bf16.vlgmr.msra.gmra.mxu1 %vm240_vm1, %v185_v12 }
  0xec   :  { %436 = vmatprep.mubr.msk.bf16.mxu1 %vm240_vm1, %v186_v13 }
  0xf3   :  { %437 = vmatmul.mubr.msk.bf16.gmra.mxu1 %vm240_vm1, %v187_v16 }
 0x1ab   :  { %v434_v18 = vpop.f32.mrf.mxu1 }
 0x1ac   :  { %v296_v41 = vadd.f32 %v434_v18, %v213_v37 }
 0x1ad   :  { %v287_v20 = vpop.f32.mrf.mxu1 }
 0x1ae   :  { %v320_v48 = vmax.f32 %v296_v41, 0.0  ;;  %v288_v49 = vadd.f32 %v287_v20, %v203_v47 }
 0x1af   :  { %v435_v22 = vpop.f32.mrf.mxu1 }
 0x1b0   :  { %v299_v38 = vadd.f32 %v435_v22, %v218_v31  ;;  %v318_v52 = vmax.f32 %v288_v49, 0.0 }
 0x1b1   :  { %v290_v23 = vpop.f32.mrf.mxu1 }
 0x1b2   :  { %v321_v44 = vmax.f32 %v299_v38, 0.0  ;;  %v291_v45 = vadd.f32 %v290_v23, %v208_v43 }
 0x1b3   :  { %v438_v25 = vpop.f32.mrf.mxu1 }
 0x1b4   :  { %v312_v28 = vadd.f32 %v438_v25, %v233_v21  ;;  %v329_v50 = vpack.c.bf16 %v321_v44, %v320_v48  ;;  %v319_v51 = vmax.f32 %v291_v45, 0.0 }
 0x1b5   :  { %v303_v27 = vpop.f32.mrf.mxu1 }
 0x1b6   :  { %v324_v33 = vmax.f32 %v312_v28, 0.0  ;;  %v304_v34 = vadd.f32 %v303_v27, %v223_v26  ;;  %v328_v54 = vpack.c.bf16 %v319_v51, %v318_v52 }
 0x1b7   :  { %v439_v29 = vpop.f32.mrf.mxu1 }
 0x1b8   :  { %v315_v30 = vadd.f32 %v439_v29, %v238_v19  ;;  %v322_v42 = vmax.f32 %v304_v34, 0.0 }
 0x1b9   :  { %v306_v32 = vpop.f32.mrf.mxu1 }
 0x1ba   :  { %v325_v35 = vmax.f32 %v315_v30, 0.0  ;;  %v307_v36 = vadd.f32 %v306_v32, %v228_v24 }
 0x1bc   :  { %v331_v39 = vpack.c.bf16 %v325_v35, %v324_v33  ;;  %v323_v40 = vmax.f32 %v307_v36, 0.0 }
 0x1be   :  { %441 = vmatpush3.bf16.msra.mxu0 %v331_v39  ;;  %v330_v46 = vpack.c.bf16 %v323_v40, %v322_v42 }
 0x1bf   :  { %442 = vmatprep.subr.bf16.mxu0 %v460_v17 }
 0x1c2   :  { %443 = vmatpush3.bf16.msra.mxu0 %v330_v46 }
 0x1c3   :  { %444 = vmatprep.subr.bf16.mxu0 %v460_v17 }
 0x1c6   :  { %445 = vmatpush3.bf16.msra.mxu0 %v329_v50 }
 0x1c7   :  { %446 = vmatprep.subr.bf16.mxu0 %v460_v17 }
 0x1ca   :  { %447 = vmatpush3.bf16.msra.mxu0 %v328_v54 }
 0x1cd   :  { %449 = vmatmul.mubr.msk.bf16.vlgmr.msra.gmra.mxu0 %vm240_vm1, %v327_v55 }
 0x28d   :  { %v375_v57 = vpop.f32.mrf.mxu0 }
 0x28e   :  { %v376_v58 = vadd.f32 %v375_v57, %v336_v56 }
 0x28f   :  { %v450_v59 = vpop.f32.mrf.mxu0 }
 0x290   :  { %457 = vtanh.f32 %v376_v58 }
 0x291   :  { %v378_v60 = vpop.f32.mrf.mxu0 }
 0x293   :  { %v451_v61 = vpop.f32.mrf.mxu0 }
 0x29d   :  { %v458_v62 = vpop.eup %457 }
 0x29e   :  { %382 = vst [vmem:[%s629_s7] sm:$0xff] %v458_v62 }

</bundles_post_ra>
